<compile_context>
chip_gen: v5e
topology: v5e:2x2
jax: 0.10.0
libtpu: 0.0.40
codegen_flags: <defaults>
</compile_context>

<pallas_src>
import functools

import jax
import jax.numpy as jnp
from jax import lax
from jax.experimental import pallas as pl
from jax.experimental.pallas import tpu as pltpu


def _conv_bn_relu_kernel(x_ref, w_ref, shift_ref, o_ref, *, precision):
    """Fused conv1d(k=3, stride=1, 'same') + per-channel shift + ReLU.

    x_ref:     (C_in, L + 2)       zero-bordered input slab (time on lanes)
    w_ref:     (co_tile, 3 * C_in) BN-scale-folded weights, tap-major K blocks
    shift_ref: (co_tile, 1)        folded conv-bias + BN shift (f32)
    o_ref:     (co_tile, L + 2)    zero-bordered output slab
    """
    Lp = o_ref.shape[-1]
    L = Lp - 2
    xp = x_ref[...]                                           # (C_in, L+2)

    # im2col-style stacked RHS: K-block k holds x_pad[:, k : k + L], so a
    # single deep MXU contraction replaces three tap matmuls + VPU adds.
    rhs = jnp.concatenate([xp[:, 0:L], xp[:, 1:L + 1], xp[:, 2:L + 2]],
                          axis=0)                             # (3*C_in, L)

    acc = jnp.dot(w_ref[...], rhs,
                  preferred_element_type=jnp.float32,
                  precision=precision)                        # (co_tile, L) f32

    y = jnp.maximum(acc + shift_ref[...], 0.0)                # shift + ReLU

    # Emit a zero-bordered slab with one full-width lane-dense store; the next
    # conv layer consumes this directly (its zero padding is already present).
    zcol = jnp.zeros((y.shape[0], 1), dtype=y.dtype)
    o_ref[...] = jnp.concatenate([zcol, y, zcol], axis=-1).astype(o_ref.dtype)


def _pick_co_tile(c_out: int) -> int:
    # Target 256 output rows (v6e/v7x MXU height), fall back to 128 (v5e MXU),
    # otherwise take the whole channel dim (full-dim blocks are always legal).
    for t in (256, 128):
        if c_out >= t and c_out % t == 0:
            return t
    return c_out


def fused_conv_bn_relu_padded(x_pad, w, b, gamma, beta, mean, var, *,
                              eps: float = 1e-5,
                              compute_dtype=jnp.float32,
                              out_dtype=None):
    """Conv1d(k=3, pad=1, stride=1) + BatchNorm1d(eval) + ReLU on a padded slab.

    x_pad: (N, C_in, L + 2) zero-bordered input slab
    w:     (C_out, C_in, 3), b/gamma/beta/mean/var: (C_out,)
    Returns a zero-bordered (N, C_out, L + 2) slab (interior columns 1..L).
    """
    if out_dtype is None:
        out_dtype = x_pad.dtype
    N, C_in, Lp = x_pad.shape
    L = Lp - 2
    C_out = w.shape[0]

    # Fold conv bias + BN into per-channel (scale, shift); fold the scale into
    # the weights so the kernel epilogue is only shift + ReLU.
    s = (gamma / jnp.sqrt(var + eps)).astype(jnp.float32)
    shift = ((b - mean) * s + beta).reshape(C_out, 1).astype(jnp.float32)
    w_scaled = w.astype(jnp.float32) * s[:, None, None]        # (C_out, C_in, 3)
    # Tap-major K blocks matching the in-kernel RHS concat order:
    #   w_stacked[o, k*C_in + i] = w[o, i, k]
    w_stacked = jnp.transpose(w_scaled, (0, 2, 1)).reshape(C_out, 3 * C_in)
    w_stacked = w_stacked.astype(compute_dtype)
    x_pad = x_pad.astype(compute_dtype)

    # f32 operands: force true-f32 MXU passes so results match an f32 reference;
    # bf16 operands are exact in bf16 so DEFAULT (single pass) is fine.
    if jnp.dtype(compute_dtype) == jnp.dtype(jnp.float32):
        precision = lax.Precision.HIGHEST
    else:
        precision = lax.Precision.DEFAULT

    co_tile = _pick_co_tile(C_out)
    # Batch innermost: weight block index depends only on the channel tile, so
    # the weight tile stays VMEM-resident across the whole batch sweep.
    grid = (C_out // co_tile, N)

    # Explicit VMEM budget (double-buffered blocks + headroom), >= 32 MiB,
    # capped below v7x's 64 MiB physical VMEM.
    itm_in = jnp.dtype(compute_dtype).itemsize
    itm_out = jnp.dtype(out_dtype).itemsize
    est = 2 * (C_in * Lp * itm_in
               + co_tile * 3 * C_in * itm_in
               + co_tile * 4
               + co_tile * Lp * itm_out)
    vmem_limit = int(min(max(2 * est, 32 * 2 ** 20), 60 * 2 ** 20))

    kernel = functools.partial(_conv_bn_relu_kernel, precision=precision)

    return pl.pallas_call(
        kernel,
        out_shape=jax.ShapeDtypeStruct((N, C_out, Lp), out_dtype),
        grid_spec=pltpu.PrefetchScalarGridSpec(
            num_scalar_prefetch=0,
            grid=grid,
            in_specs=[
                pl.BlockSpec((None, C_in, Lp), lambda c, n: (n, 0, 0)),
                pl.BlockSpec((co_tile, 3 * C_in), lambda c, n: (c, 0)),
                pl.BlockSpec((co_tile, 1), lambda c, n: (c, 0)),
            ],
            out_specs=pl.BlockSpec((None, co_tile, Lp), lambda c, n: (n, c, 0)),
        ),
        compiler_params=pltpu.CompilerParams(
            dimension_semantics=("parallel", "parallel"),
            vmem_limit_bytes=vmem_limit),
    )(x_pad, w_stacked, shift)


def conv_block_forward(x, params1, params2, *, stride: int = 1,
                       compute_dtype=jnp.float32):
    """Pallas implementation of conv_block.forward (two fused conv+BN+ReLU)."""
    out_dtype = x.dtype
    # Pad the external input once; thereafter the kernels chain zero-bordered
    # slabs directly (no intermediate pad pass when stride == 1).
    x_pad = jnp.pad(x, ((0, 0), (0, 0), (1, 1)))

    y1 = fused_conv_bn_relu_padded(x_pad, *params1,
                                   compute_dtype=compute_dtype,
                                   out_dtype=compute_dtype)
    if stride > 1:
        # stride-s conv (k=3, pad=1) == stride-1 'same' conv subsampled at
        # positions 0, s, 2s, ...; re-pad the subsampled slab for conv2.
        y1 = jnp.pad(y1[:, :, 1:-1:stride], ((0, 0), (0, 0), (1, 1)))

    y2 = fused_conv_bn_relu_padded(y1, *params2,
                                   compute_dtype=compute_dtype,
                                   out_dtype=out_dtype)
    out = y2[:, :, 1:-1]
    if stride > 1:
        out = out[:, :, ::stride]
    return out


# ---------------------------------------------------------------------------
# Pure-JAX reference (matches PyTorch eval-mode forward) for validation.
# ---------------------------------------------------------------------------
def _ref_conv_bn_relu(x, w, b, gamma, beta, mean, var, stride, eps=1e-5):
    y = lax.conv_general_dilated(
        x, w, window_strides=(stride,), padding=[(1, 1)],
        dimension_numbers=("NCH", "OIH", "NCH"),
        precision=lax.Precision.HIGHEST)
    y = y + b[None, :, None]
    y = (y - mean[None, :, None]) * (
        gamma[None, :, None] / jnp.sqrt(var[None, :, None] + eps))
    y = y + beta[None, :, None]
    return jnp.maximum(y, 0.0)


def _ref_conv_block(x, p1, p2, stride):
    y = _ref_conv_bn_relu(x, *p1, stride)
    return _ref_conv_bn_relu(y, *p2, stride)


if __name__ == "__main__":
    key = jax.random.PRNGKey(0)
    N, C_in, C_out, L, stride = 2, 4, 8, 16, 1

    keys = jax.random.split(key, 3)
    x = jax.random.normal(keys[0], (N, C_in, L), jnp.float32)

    def make_params(k, cin, cout):
        kw, kb, kg, kbe, km, kv = jax.random.split(k, 6)
        w = 0.3 * jax.random.normal(kw, (cout, cin, 3), jnp.float32)
        b = 0.1 * jax.random.normal(kb, (cout,), jnp.float32)
        gamma = 1.0 + 0.1 * jax.random.normal(kg, (cout,), jnp.float32)
        beta = 0.1 * jax.random.normal(kbe, (cout,), jnp.float32)
        mean = 0.1 * jax.random.normal(km, (cout,), jnp.float32)
        var = jnp.abs(jax.random.normal(kv, (cout,), jnp.float32)) + 0.5
        return (w, b, gamma, beta, mean, var)

    p1 = make_params(keys[1], C_in, C_out)     # conv1 / bn1
    p2 = make_params(keys[2], C_out, C_out)    # conv2 / bn2

    ref = _ref_conv_block(x, p1, p2, stride)

    # f32 operand path (precision=HIGHEST): tight check.
    out_f32 = conv_block_forward(x, p1, p2, stride=stride,
                                 compute_dtype=jnp.float32)
    out_f32 = jax.block_until_ready(out_f32)
    assert out_f32.shape == ref.shape, (out_f32.shape, ref.shape)
    assert jnp.allclose(out_f32, ref, atol=1e-3, rtol=1e-3), \
        "f32 path mismatch vs reference"

    # bf16 operand path (f32 accumulation): loose check.
    out_bf16 = conv_block_forward(x, p1, p2, stride=stride,
                                  compute_dtype=jnp.bfloat16)
    out_bf16 = jax.block_until_ready(out_bf16)
    assert out_bf16.shape == ref.shape, (out_bf16.shape, ref.shape)
    assert jnp.allclose(out_bf16, ref, atol=5e-2, rtol=5e-2), \
        "bf16 path mismatch vs reference"

    print("KERNEL_OK")
</pallas_src>

<mosaic_0001>
module attributes {stable_mosaic.version = 11 : i64} {
  func.func @_conv_bn_relu_kernel(%arg0: i32, %arg1: i32, %arg2: memref<1x4x18xf32, #tpu.memory_space<vmem>>, %arg3: memref<8x12xf32, #tpu.memory_space<vmem>>, %arg4: memref<8x1xf32, #tpu.memory_space<vmem>>, %arg5: memref<1x8x18xf32, #tpu.memory_space<vmem>>) attributes {dimension_semantics = [#tpu.dimension_semantics<parallel>, #tpu.dimension_semantics<parallel>], iteration_bounds = array<i64: 1, 2>, scalar_prefetch = 0 : i64, scratch_operands = 0 : i64, tpu.core_type = #tpu.core_type<tc>, window_params = [{transform_indices = @transform_0, window_bounds = array<i64: 1, 4, 18>}, {transform_indices = @transform_1, window_bounds = array<i64: 8, 12>}, {transform_indices = @transform_2, window_bounds = array<i64: 8, 1>}, {transform_indices = @transform_3, window_bounds = array<i64: 1, 8, 18>}]} {
    %c0 = arith.constant 0 : index
    %c0_0 = arith.constant 0 : index
    %c0_1 = arith.constant 0 : index
    %0 = vector.load %arg2[%c0, %c0_0, %c0_1] : memref<1x4x18xf32, #tpu.memory_space<vmem>>, vector<1x4x18xf32>
    %1 = vector.shape_cast %0 : vector<1x4x18xf32> to vector<4x18xf32>
    %2 = vector.extract_strided_slice %1 {offsets = [0, 0], sizes = [4, 16], strides = [1, 1]} : vector<4x18xf32> to vector<4x16xf32>
    %3 = vector.extract_strided_slice %1 {offsets = [0, 1], sizes = [4, 16], strides = [1, 1]} : vector<4x18xf32> to vector<4x16xf32>
    %4 = vector.extract_strided_slice %1 {offsets = [0, 2], sizes = [4, 16], strides = [1, 1]} : vector<4x18xf32> to vector<4x16xf32>
    %5 = tpu.concatenate %2, %3, %4 in 0 : vector<4x16xf32>, vector<4x16xf32>, vector<4x16xf32> -> vector<12x16xf32>
    %c0_2 = arith.constant 0 : index
    %c0_3 = arith.constant 0 : index
    %6 = vector.load %arg3[%c0_2, %c0_3] : memref<8x12xf32, #tpu.memory_space<vmem>>, vector<8x12xf32>
    %cst = arith.constant dense<0.000000e+00> : vector<8x16xf32>
    %7 = tpu.matmul %6, %5, %cst {dimension_numbers = #tpu.dot_dimension_numbers<[1], [0], [0], [1], [0, 0, 1, 1], [], []>, precision = #tpu.contract_precision<fp32>} : vector<8x12xf32>, vector<12x16xf32>, vector<8x16xf32> -> vector<8x16xf32>
    %c0_4 = arith.constant 0 : index
    %c0_5 = arith.constant 0 : index
    %8 = vector.load %arg4[%c0_4, %c0_5] : memref<8x1xf32, #tpu.memory_space<vmem>>, vector<8x1xf32>
    %9 = vector.broadcast %8 : vector<8x1xf32> to vector<8x16xf32>
    %10 = arith.addf %7, %9 : vector<8x16xf32>
    %cst_6 = arith.constant 0.000000e+00 : f32
    %11 = vector.broadcast %cst_6 : f32 to vector<8x16xf32>
    %12 = arith.maximumf %10, %11 : vector<8x16xf32>
    %cst_7 = arith.constant 0.000000e+00 : f32
    %13 = vector.broadcast %cst_7 : f32 to vector<8x1xf32>
    %14 = tpu.concatenate %13, %12, %13 in 1 : vector<8x1xf32>, vector<8x16xf32>, vector<8x1xf32> -> vector<8x18xf32>
    %c0_8 = arith.constant 0 : index
    %c0_9 = arith.constant 0 : index
    %c0_10 = arith.constant 0 : index
    %15 = vector.load %arg5[%c0_8, %c0_9, %c0_10] : memref<1x8x18xf32, #tpu.memory_space<vmem>>, vector<1x8x18xf32>
    %16 = vector.shape_cast %15 : vector<1x8x18xf32> to vector<8x18xf32>
    %17 = vector.shape_cast %14 : vector<8x18xf32> to vector<1x8x18xf32>
    tpu.vector_store %arg5[%c0_8, %c0_9, %c0_10], %17 {strides = array<i32>} : memref<1x8x18xf32, #tpu.memory_space<vmem>>, vector<1x8x18xf32>,
    return
  }
  func.func @transform_0(%arg0: i32, %arg1: i32) -> (i32, i32, i32) {
    %c0_i32 = arith.constant 0 : i32
    %c0_i32_0 = arith.constant 0 : i32
    %c0_i32_1 = arith.constant 0 : i32
    return %arg1, %c0_i32, %c0_i32_0 : i32, i32, i32
  }
  func.func @transform_1(%arg0: i32, %arg1: i32) -> (i32, i32) {
    %c0_i32 = arith.constant 0 : i32
    %c0_i32_0 = arith.constant 0 : i32
    return %arg0, %c0_i32 : i32, i32
  }
  func.func @transform_2(%arg0: i32, %arg1: i32) -> (i32, i32) {
    %c0_i32 = arith.constant 0 : i32
    %c0_i32_0 = arith.constant 0 : i32
    return %arg0, %c0_i32 : i32, i32
  }
  func.func @transform_3(%arg0: i32, %arg1: i32) -> (i32, i32, i32) {
    %c0_i32 = arith.constant 0 : i32
    %c0_i32_0 = arith.constant 0 : i32
    return %arg1, %arg0, %c0_i32 : i32, i32, i32
  }
}

</mosaic_0001>

<bundles_post_ra>
// kernel: tpu_custom_call.1
= control target key start
LH: loop header
LB: loop body
LE: loop exit
PB: predicated region body
PF: predicated region fallthrough
CT: control target
= control target key end

     0   :  { %8 = vsyncpa [#allocation3], 0  ;;  %s854_s0 = inlined_call_operand.vmem [shape: f32[2,4,18], index: 0, kind: input, shape index: {}]   ;;  %s855_s1 = inlined_call_operand.hbm [shape: f32[8,12], index: 1, kind: input, shape index: {}]   ;;  %s856_s2 = inlined_call_operand.vmem [shape: f32[8,1], index: 2, kind: input, shape index: {}]   ;;  %s857_s3 = inlined_call_operand.hbm [shape: f32[2,8,18], index: 3, kind: output, shape index: {}]  }
   0x1   :  { %9 = vsyncpa [#allocation4], 0 }
   0x2   :  { %11 = vsyncpa [#allocation4 + $0x1], 0  ;;  %s751_s12 = smov 0   ;;  %s753_s13 = smov 0  }
   0x3   :  { %s755_s14 = smov 0   ;;  %s757_s15 = smov 0  }
   0x4   :  { %s759_s16 = smov 0   ;;  %s761_s17 = smov 0  }
   0x5 LB: > { %s526_s18 = sadd.s32 4294967295, %s724_s17   ;;  %s527_s19 = sadd.s32 4294967294, %s724_s17   ;;  %s724_s17 = sphi %s761_s17, %s17_s17   ;;  %s720_s16 = sphi %s759_s16, %s864_s16   ;;  %s716_s15 = sphi %s757_s15, %s863_s15   ;;  %s712_s14 = sphi %s755_s14, %s862_s14   ;;  %s708_s13 = sphi %s753_s13, %s861_s13   ;;  %s704_s12 = sphi %s751_s12, %s860_s12  }
   0x6   : > { %s26_s20 = sadd.s32 1, %s720_s16  ;;  %s116_s21 = sadd.s32 1, %s712_s14 }
   0x7   : > { %p27_p0 = scmp.ge.s32.totalorder %s26_s20, 2  ;;  %p126_p1 = scmp.ne.s32.totalorder %s712_s14, %s708_s13 }
   0x8   : > { %p127_p2 = scmp.eq.s32.totalorder %s526_s18, 1  ;;  %p132_p3 = scmp.ne.s32.totalorder %s708_s13, %s704_s12 }
   0x9   : > { %s866_s20 = smov (%p27_p0, %s26_s20), 0  ;;  %p133_p5 = scmp.eq.s32.totalorder %s527_s19, 1 }
   0xa   : > { %p791_p4 = por %p127_p2, %p126_p1  ;;  %s111_s23 = ssub.s32 %s720_s16, %s866_s20 }
   0xb   : > { %p528_p6 = scmp.ge.s32.totalorder %s724_s17, 1  ;;  %p114_p7 = scmp.eq.s32.totalorder %s111_s23, 0 }
   0xc   : > { %p798_p8 = por %p133_p5, %p132_p3  ;;  %p140_p9 = scmp.lt.s32.totalorder %s724_s17, 3 }
   0xd   : > { %s804_s25 = scalar_select %p114_p7, %s712_s14, %s116_s21  }
   0xe   : > { %p141_p10 = pnand %p528_p6, %p140_p9  ;;  %p554_p11 = scmp.eq.s32.totalorder %s526_s18, 0 }
   0xf   : > { %s154_s28 = sshll.u32 %s855_s1, 4  ;;  %s726_s29 = smov [#allocation2]   ;;  %s155_s28 = int_to_ptr.hbm [resolvable:$true] %s154_s28 }
  0x10   : > { %p546_p12 = pneg %p141_p10  ;;  %s156_s30 = sshll.u32 %s726_s29, 4  ;;  %s157_s30 = int_to_ptr.vmem [resolvable:$true] %s156_s30 }
  0x11   : > { %183 = sbr.rel (%p141_p10) target bundleno = 423 (0x1a7), region = 32 }
  0x12   : > { %p547_p13 = pnand %p554_p11, %p546_p12 }
  0x14   : > { %549 = dma.hbm_to_vmem [thread:$0]  (!%p547_p13), %s155_s28, 128, %s157_s30, [#allocation3]  }
  0x16   : > { %695 = dma.done.wait (%p554_p11), [#allocation3], 128  }
  0x17   : > { %697 = vsyncadd (%p554_p11), [#allocation3], 4294967168  ;;  %p211_p0 = scmp.lt.s32.totalorder %s716_s15, 1  ;;  %s727_s9 = smov 126   ;;  %v229_v2 = vld [vmem:[#allocation2] sm:$0xff]  ;;  %vm236_vm0 = vcmask 97280  }
  0x18   : > { %s728_s10 = smov 127   ;;  %v238_v3 = vsel %vm236_vm0, %v229_v2, 0  ;;  %v729_v4 = vmov 0   ;;  %v230_v6 = vld [vmem:[%s856_s2] sm:$0xff]  ;;  %vm227_vm1 = vcmask 1043456   ;;  %s730_s19 = smov 1  }
  0x19   : > { %s212_s4 = scalar_select %p211_p0, %s716_s15, 1  ;;  %610 = vset.pattern.permute.xlu1 %v729_v4  ;;  %611 = vset.pattern.permute.xlu0 %v729_v4  ;;  %v260_v5 = vand.u32 4294901760, %v238_v3  ;;  %vm406_vm2 = vcmask 7168   ;;  %vm408_vm3 = vcmask 138240   ;;  %vm410_vm4 = vcmask 146432  }
  0x1a   : > { %233 = vperm.xlu1 %610, %v230_v6   ;;  %s208_s21 = sand.u32 1, %s708_s13   ;;  %s537_s26 = sshll.u32 %s716_s15, 3 }
  0x1b   : > { %s535_s5 = sshll.u32 %s212_s4, 2  ;;  %v261_v7 = vsub.f32 %v238_v3, %v260_v5  ;;  %s534_s23 = sshll.u32 %s208_s21, 3 }
  0x1c   : > { %s214_s8 = scalar_lea.vmem %s854_s0, %s535_s5  ;;  %s424_s29 = scalar_lea.hbm %s857_s3, %s537_s26 }
  0x1d   : > { %v219_v0 = vld [vmem:[%s214_s8] sm:$0xf]  ;;  %v262_v11 = vand.u32 4294901760, %v261_v7  ;;  %s210_s30 = scalar_lea.vmem [#allocation5], %s534_s23  ;;  %s428_s5 = sshll.u32 %s424_s29, 4  ;;  %s429_s5 = int_to_ptr.hbm [resolvable:$true] %s428_s5 }
  0x1e   : > { %225 = vrot.lane.b32.xlu0 %v219_v0, %s727_s9  ;;  %v221_v1 = vrot.slane %v219_v0, 4  ;;  %s426_s4 = sshll.u32 %s210_s30, 4  ;;  %s413_s6 = scalar_lea.sflag [#allocation4], %s208_s21  ;;  %s427_s4 = int_to_ptr.vmem [resolvable:$true] %s426_s4 }
  0x1f   : > { %v263_v14 = vsub.f32 %v261_v7, %v262_v11  ;;  %s656_s7 = sshra.s32 %s429_s5, 4  ;;  %s657_s7 = int_to_ptr.hbm [resolvable:$true] %s656_s7 }
  0x20   : > { %s658_s15 = scalar_lea.hbm %s657_s7, 8  ;;  %p663_p5 = scmp.lt.s32.totalorder %s657_s7, %s857_s3 }
  0x21   : > { %v264_v20 = vand.u32 4294901760, %v263_v14  ;;  %p659_p1 = scmp.ne.s32.totalorder %s657_s7, %s658_s15 }
  0x23   : > { %p660_p2 = pnand %p659_p1, %p791_p4 }
  0x25   : > { %p661_p3 = pneg %p660_p2 }
  0x26   : > { %222 = vrot.lane.b32.xlu0 %v221_v1, %s728_s10  ;;  %s662_s10 = scalar_lea.hbm %s857_s3, 16 }
  0x27   : > { %p664_p6 = scmp.lt.s32.totalorder %s662_s10, %s658_s15 }
  0x29   : > { %p665_p7 = por %p664_p6, %p663_p5 }
  0x2b   : > { %p666_p9 = pnand %p665_p7, %p661_p3 }
  0x8c   : > { %v234_v25 = vpop.permute.xlu1 %233 }
  0x90   : > { %v226_v8 = vpop.permute.xlu0 %225 }
  0x91   : > { %v240_v9 = vsel %vm227_vm1, %v226_v8, 0 }
  0x92   : > { %v256_v10 = vand.u32 4294901760, %v240_v9 }
  0x94   : > { %v284_v12 = vsub.f32 %v240_v9, %v256_v10  ;;  %257 = vmatpush.msra.mxu0 %v256_v10  ;;  %341 = vmatpush.msra.mxu3 %v256_v10 }
  0x96   : > { %316 = vmatpush.msra.mxu2 %v284_v12  ;;  %v285_v13 = vand.u32 4294901760, %v284_v12 }
  0x98   : > { %v223_v15 = vpop.permute.xlu0 %222  ;;  %v286_v16 = vsub.f32 %v284_v12, %v285_v13 }
  0x99   : > { %v228_v17 = vsel %vm227_vm1, %v219_v0, %v223_v15 }
  0x9a   : > { %v258_v18 = vand.u32 4294901760, %v228_v17  ;;  %v287_v19 = vand.u32 4294901760, %v286_v16 }
  0x9c   : > { %v290_v21 = vsub.f32 %v228_v17, %v258_v18  ;;  %259 = vmatpush.msra.mxu0 %v258_v18  ;;  %288 = vmatpush.msra.mxu1 %v287_v19 }
  0x9d   : > { %343 = vmatpush.msra.mxu3 %v258_v18  ;;  %265 = vmatmul.f32.vlgmr.msra.gmra.mxu0 %v264_v20 }
  0x9e   : > { %368 = vmatpush.msrb.mxu0 %v285_v13  ;;  %319 = vmatpush.msra.mxu2 %v290_v21  ;;  %v291_v22 = vand.u32 4294901760, %v290_v21 }
  0x9f   : > { %322 = vmatmul.f32.vlgmr.msra.gmra.mxu2 %v261_v7  ;;  %347 = vmatmul.f32.vlgmr.msra.gmra.mxu3 %v262_v11 }
  0xa0   : > { %372 = vmatpush.msrb.mxu0 %v291_v22  ;;  %v292_v23 = vsub.f32 %v290_v21, %v291_v22 }
  0xa2   : > { %v293_v24 = vand.u32 4294901760, %v292_v23 }
  0xa4   : > { %294 = vmatpush.msra.mxu1 %v293_v24 }
  0xa5   : > { %296 = vmatmul.f32.vlgmr.msra.gmra.mxu1 %v260_v5  ;;  %374 = vmatmul.f32.vlgmr.msrb.gmra.mxu0 %v260_v5 }
  0xa6   : > { %393 = vmatpush.msrb.mxu1 %v256_v10 }
  0xa8   : > { %395 = vmatpush.msrb.mxu1 %v258_v18 }
  0xad   : > { %397 = vmatmul.f32.vlgmr.msrb.gmra.mxu1 %v260_v5 }
 0x11a   : > { %v266_v26 = vpop.f32.mrf.mxu0 }
 0x11b   : > { %v267_v27 = vadd.f32 %v266_v26, %v234_v25 }
 0x122   : > { %v297_v28 = vpop.f32.mrf.mxu1  ;;  %v323_v29 = vpop.f32.mrf.mxu2 }
 0x123   : > { %v298_v30 = vadd.f32 %v297_v28, %v267_v27  ;;  %v348_v31 = vpop.f32.mrf.mxu3  ;;  %v375_v33 = vpop.f32.mrf.mxu0 }
 0x125   : > { %v324_v32 = vadd.f32 %v323_v29, %v298_v30 }
 0x127   : > { %v349_v34 = vadd.f32 %v348_v31, %v324_v32 }
 0x129   : > { %v376_v35 = vadd.f32 %v375_v33, %v349_v34 }
 0x12a   : > { %v398_v36 = vpop.f32.mrf.mxu1 }
 0x12b   : > { %v399_v37 = vadd.f32 %v398_v36, %v376_v35 }
 0x12d   : > { %v401_v38 = vmax.f32 %v399_v37, 0.0 }
 0x12f   : > { %403 = vrot.lane.b32.xlu1 %v401_v38, %s730_s19 }
 0x1a1   : > { %v404_v39 = vpop.permute.xlu1 %403 }
 0x1a2   : > { %v407_v40 = vsel %vm406_vm2, 0.0, %v404_v39 }
 0x1a3   : > { %v409_v41 = vsel %vm408_vm3, %v407_v40, 0.0 }
 0x1a4   : > { %411 = vst.msk [vmem:[%s210_s30] sm:$0xff] %vm410_vm4, %v409_v41 }
 0x1a5   : > { %669 = shalt.err (!%p666_p9)
}
 0x1a6   : > { %544 = dma.vmem_to_hbm [thread:$0]  (%p791_p4), %s427_s4, 128, %s429_s5, %s413_s6  }
 0x1a7 PF: > { %p556_p10 = scmp.ge.s32.totalorder %s724_s17, 2  ;;  %s440_s19 = sand.u32 1, %s704_s12  }
 0x1a8   : > { %s441_s21 = scalar_lea.sflag [#allocation4], %s440_s19 }
 0x1a9   : > { %p551_p11 = pnand %p556_p10, %p798_p8 }
 0x1ab   : > { %p552_p12 = pneg %p551_p11 }
 0x1ad   : > { %699 = dma.done.wait (%p552_p12), %s441_s21, 128  }
 0x1ae   : > { %701 = vsyncadd (%p552_p12), %s441_s21, 4294967168  ;;  %s17_s17 = sadd.s32 1, %s724_s17   ;;  %s860_s12 = smov %s708_s13 }
 0x1af   : > { %p14_p13 = scmp.ge.s32.totalorder %s17_s17, 4   ;;  %s861_s13 = smov %s712_s14 }
 0x1b0   : > { %s862_s14 = smov %s804_s25  ;;  %s863_s15 = smov %s720_s16 }
 0x1b1   : > { %s864_s16 = smov %s866_s20  ;;  %16 = sbr.rel (!%p14_p13) target bundleno = 5 (0x5), region = 76 }
 0x1b6   :  { %447 = vsyncpa [#allocation3], 1 }
 0x1b7   :  { %449 = vsyncpa [#allocation3 + $0x1], 1 }
 0x1b8   :  { %450 = vsyncpa [#allocation4], 1 }
 0x1b9   :  { %452 = vsyncpa [#allocation4 + $0x1], 1 }

</bundles_post_ra>
